<compile_context>
chip_gen: v6e
topology: v6e:2x2x1
jax: 0.10.0
libtpu: 0.0.40
codegen_flags: <defaults>
</compile_context>

<pallas_src>
import math

import jax
import jax.numpy as jnp
from jax.experimental import pallas as pl
from jax.experimental.pallas import tpu as pltpu

_LANES = 128
_MAX_TILE_ELEMS = 1 << 20  # ~4 MiB of f32 per pipelined buffer


def _offset_scale_kernel(x_ref, g_ref, b_ref, q_ref, qp_ref, k_ref):
    # x_ref: (TR, L) row tile.  g_ref / b_ref: full (3, L) f32, resident in VMEM.
    # Compute in f32 regardless of input/output dtype (v5e has no bf16 VPU);
    # cast only at the store so narrower out_dtype just cuts write traffic.
    x = x_ref[...].astype(jnp.float32)
    g = g_ref[...]
    b = b_ref[...]
    q_ref[...] = (x * g[0, :] + b[0, :]).astype(q_ref.dtype)
    qp_ref[...] = (x * g[1, :] + b[1, :]).astype(qp_ref.dtype)
    k_ref[...] = (x * g[2, :] + b[2, :]).astype(k_ref.dtype)


def _pack_lane_dense(N, S, D):
    """Choose a lane-dense row layout: x.reshape(rows, L) with L % 128 == 0.

    Returns (rows, L, reps) where reps = L // D is how many consecutive feature
    vectors are packed per 128*k-lane row (gamma/beta get tiled `reps` times).
    Generalized to L = lcm(D, 128) so D = 96, 192, 320, ... stay lane-dense.
    """
    total = N * S * D
    if D % _LANES == 0:
        return total // D, D, 1
    L = math.lcm(D, _LANES)
    if total % L == 0:
        return total // L, L, L // D
    # Fallback: keep (N*S, D).  Correct, but stores are lane-masked when
    # D % 128 != 0.
    return N * S, D, 1


def _sublane_mult(dtype):
    """Sublane multiple for a packed dtype tile: f32->8, bf16->16, 8-bit->32."""
    itemsize = jnp.dtype(dtype).itemsize
    return max(8, 32 // max(1, itemsize))


def _pick_row_tile(rows, L, sub_mult, *, min_grid_steps=8):
    """Row-tile size.

    Multiple of `sub_mult` (packed-dtype sublanes), capped at ~4 MiB f32 per
    buffer, preferring an exact divisor of `rows` (full tiles -> unmasked
    stores end-to-end) and enough grid steps for v7x's 2-TC split.
    """
    if rows <= sub_mult:
        return rows  # block dim == full array dim (allowed)
    cap = min(rows, max(sub_mult, _MAX_TILE_ELEMS // L))
    # Aim for at least `min_grid_steps` steps so v7x's 2 TensorCores get an
    # even split (harmless on v5e/v6e; per-step overhead stays negligible).
    target = min(cap, max(sub_mult, rows // min_grid_steps))
    target = max(sub_mult, (target // sub_mult) * sub_mult)
    # Prefer an exact divisor of rows near `target` (search down to target/2).
    t = target
    floor = max(sub_mult, target // 2)
    while t >= floor:
        if rows % t == 0:
            return t
        t -= sub_mult
    return target  # ragged last step: correct, masked writes on that step only


def _offset_scale_pallas(x, gamma, beta, out_dtype):
    N, S, D = x.shape
    rows, L, reps = _pack_lane_dense(N, S, D)

    x2 = x.reshape(rows, L)
    g2 = gamma.astype(jnp.float32)
    b2 = beta.astype(jnp.float32)
    if reps > 1:
        g2 = jnp.tile(g2, (1, reps))  # (3, L)
        b2 = jnp.tile(b2, (1, reps))  # (3, L)

    sub_mult = max(_sublane_mult(x.dtype), _sublane_mult(out_dtype))
    tr = _pick_row_tile(rows, L, sub_mult)
    grid = (pl.cdiv(rows, tr),)

    # VMEM limit from the actual double-buffered pipeline footprint + margin.
    in_bytes = tr * L * jnp.dtype(x.dtype).itemsize
    out_bytes = tr * L * jnp.dtype(out_dtype).itemsize
    param_bytes = 2 * (3 * L * 4)  # gamma + beta blocks (f32)
    footprint = 2 * (in_bytes + 3 * out_bytes + param_bytes) + (4 << 20)
    vmem_limit = int(max(footprint, 8 << 20))

    x_spec = pl.BlockSpec((tr, L), lambda i: (i, 0))
    p_spec = pl.BlockSpec((3, L), lambda i: (0, 0))
    o_spec = pl.BlockSpec((tr, L), lambda i: (i, 0))
    out_sd = jax.ShapeDtypeStruct((rows, L), out_dtype)

    q2, qp2, k2 = pl.pallas_call(
        _offset_scale_kernel,
        out_shape=(out_sd, out_sd, out_sd),
        grid_spec=pltpu.PrefetchScalarGridSpec(
            num_scalar_prefetch=0,
            grid=grid,
            in_specs=[x_spec, p_spec, p_spec],
            out_specs=[o_spec, o_spec, o_spec],
        ),
        compiler_params=pltpu.CompilerParams(
            dimension_semantics=("parallel",),
            vmem_limit_bytes=vmem_limit,
        ),
    )(x2, g2, b2)

    shape = (N, S, D)
    return q2.reshape(shape), qp2.reshape(shape), k2.reshape(shape)


def offset_scale(x, gamma, beta, *, out_dtype=None, min_pallas_elements=1 << 20):
    """OffsetScale forward.

    x: (N, S, D); gamma, beta: (3, D).  Returns (Q, Qp, K), each (N, S, D).

    out_dtype: output dtype for the three streams.  Default keeps the module's
    semantics (same dtype as x).  RECOMMENDED: jnp.bfloat16 — the kernel is
    HBM-bound at 1 read + 3 writes, compute stays f32, only the stores are
    cast, which drops per-element traffic 16 B -> 10 B (~1.6x wall-clock).
    """
    N, S, D = x.shape
    assert gamma.shape == (3, D) and beta.shape == (3, D)
    out_dtype = x.dtype if out_dtype is None else jnp.dtype(out_dtype)

    if N * S * D < min_pallas_elements:
        # Tiny problem: pallas_call launch / per-step overhead dominates.
        xf = x.astype(jnp.float32)
        out = (xf[:, :, None, :] * gamma.astype(jnp.float32)[None, None]
               + beta.astype(jnp.float32)[None, None]).astype(out_dtype)
        return out[..., 0, :], out[..., 1, :], out[..., 2, :]

    return _offset_scale_pallas(x, gamma, beta, out_dtype)


def _ref(x, gamma, beta):
    xf = x.astype(jnp.float32)
    out = xf[:, :, None, :] * gamma.astype(jnp.float32)[None, None] \
        + beta.astype(jnp.float32)[None, None]
    return out[..., 0, :], out[..., 1, :], out[..., 2, :]


if __name__ == "__main__":
    key = jax.random.PRNGKey(0)
    kx, kg, kx2, kg2, kx3, kg3 = jax.random.split(key, 6)

    # --- Case 1: small shape, lcm lane-packing path (D=32 -> L=128, reps=4) ---
    N, S, D = 2, 8, 32
    x = jax.random.normal(kx, (N, S, D), dtype=jnp.float32)
    gamma = 0.02 * jax.random.normal(kg, (3, D), dtype=jnp.float32)  # std=0.02 init
    beta = jnp.zeros((3, D), dtype=jnp.float32)

    # Force the Pallas path even at demo size so the kernel is exercised.
    Q, Qp, K = offset_scale(x, gamma, beta, min_pallas_elements=0)
    jax.block_until_ready((Q, Qp, K))
    rQ, rQp, rK = _ref(x, gamma, beta)
    assert Q.shape == (N, S, D) and Qp.shape == (N, S, D) and K.shape == (N, S, D)
    assert jnp.allclose(Q, rQ, atol=1e-6)
    assert jnp.allclose(Qp, rQp, atol=1e-6)
    assert jnp.allclose(K, rK, atol=1e-6)

    # --- Case 2: already lane-dense (D % 128 == 0), bf16 output stores -------
    N2, S2, D2 = 2, 16, 256
    xb = jax.random.normal(kx2, (N2, S2, D2), dtype=jnp.float32)
    gb = 0.02 * jax.random.normal(kg2, (3, D2), dtype=jnp.float32)
    bb = jnp.zeros((3, D2), dtype=jnp.float32)
    Q2, Qp2, K2 = offset_scale(xb, gb, bb, out_dtype=jnp.bfloat16,
                               min_pallas_elements=0)
    jax.block_until_ready((Q2, Qp2, K2))
    r2Q, r2Qp, r2K = _ref(xb, gb, bb)
    assert Q2.dtype == jnp.bfloat16
    # bf16 outputs: loosen tolerance.
    assert jnp.allclose(Q2.astype(jnp.float32), r2Q, atol=1e-2)
    assert jnp.allclose(Qp2.astype(jnp.float32), r2Qp, atol=1e-2)
    assert jnp.allclose(K2.astype(jnp.float32), r2K, atol=1e-2)

    # --- Case 3: generalized lcm path (D=96 -> L=384), bf16 input ------------
    N3, S3, D3 = 2, 8, 96
    xc = jax.random.normal(kx3, (N3, S3, D3), dtype=jnp.float32).astype(jnp.bfloat16)
    gc = 0.02 * jax.random.normal(kg3, (3, D3), dtype=jnp.float32)
    bc = jnp.zeros((3, D3), dtype=jnp.float32)
    Q3, Qp3, K3 = offset_scale(xc, gc, bc, out_dtype=jnp.float32,
                               min_pallas_elements=0)
    jax.block_until_ready((Q3, Qp3, K3))
    r3Q, r3Qp, r3K = _ref(xc, gc, bc)
    assert jnp.allclose(Q3, r3Q, atol=1e-2)
    assert jnp.allclose(Qp3, r3Qp, atol=1e-2)
    assert jnp.allclose(K3, r3K, atol=1e-2)

    print("KERNEL_OK")
</pallas_src>

<mosaic_0001>
module attributes {stable_mosaic.version = 11 : i64} {
  func.func @_offset_scale_kernel(%arg0: i32, %arg1: memref<4x128xf32, #tpu.memory_space<vmem>>, %arg2: memref<3x128xf32, #tpu.memory_space<vmem>>, %arg3: memref<3x128xf32, #tpu.memory_space<vmem>>, %arg4: memref<4x128xf32, #tpu.memory_space<vmem>>, %arg5: memref<4x128xf32, #tpu.memory_space<vmem>>, %arg6: memref<4x128xf32, #tpu.memory_space<vmem>>) attributes {dimension_semantics = [#tpu.dimension_semantics<parallel>], iteration_bounds = array<i64: 1>, scalar_prefetch = 0 : i64, scratch_operands = 0 : i64, tpu.core_type = #tpu.core_type<tc>, window_params = [{transform_indices = @transform_0, window_bounds = array<i64: 4, 128>}, {pipeline_mode = #tpu.pipeline_mode<synchronous>, transform_indices = @transform_1, window_bounds = array<i64: 3, 128>}, {pipeline_mode = #tpu.pipeline_mode<synchronous>, transform_indices = @transform_2, window_bounds = array<i64: 3, 128>}, {transform_indices = @transform_3, window_bounds = array<i64: 4, 128>}, {transform_indices = @transform_4, window_bounds = array<i64: 4, 128>}, {transform_indices = @transform_5, window_bounds = array<i64: 4, 128>}]} {
    %c0 = arith.constant 0 : index
    %c0_0 = arith.constant 0 : index
    %0 = vector.load %arg1[%c0, %c0_0] : memref<4x128xf32, #tpu.memory_space<vmem>>, vector<4x128xf32>
    %c0_1 = arith.constant 0 : index
    %c0_2 = arith.constant 0 : index
    %1 = vector.load %arg2[%c0_1, %c0_2] : memref<3x128xf32, #tpu.memory_space<vmem>>, vector<3x128xf32>
    %c0_3 = arith.constant 0 : index
    %c0_4 = arith.constant 0 : index
    %2 = vector.load %arg3[%c0_3, %c0_4] : memref<3x128xf32, #tpu.memory_space<vmem>>, vector<3x128xf32>
    %3 = vector.extract_strided_slice %1 {offsets = [0, 0], sizes = [1, 128], strides = [1, 1]} : vector<3x128xf32> to vector<1x128xf32>
    %4 = vector.shape_cast %3 : vector<1x128xf32> to vector<128xf32>
    %5 = vector.shape_cast %4 : vector<128xf32> to vector<1x128xf32>
    %6 = vector.broadcast %5 : vector<1x128xf32> to vector<4x128xf32>
    %7 = arith.mulf %0, %6 : vector<4x128xf32>
    %8 = vector.extract_strided_slice %2 {offsets = [0, 0], sizes = [1, 128], strides = [1, 1]} : vector<3x128xf32> to vector<1x128xf32>
    %9 = vector.shape_cast %8 : vector<1x128xf32> to vector<128xf32>
    %10 = vector.shape_cast %9 : vector<128xf32> to vector<1x128xf32>
    %11 = vector.broadcast %10 : vector<1x128xf32> to vector<4x128xf32>
    %12 = arith.addf %7, %11 : vector<4x128xf32>
    %c0_5 = arith.constant 0 : index
    %c0_6 = arith.constant 0 : index
    %13 = vector.load %arg4[%c0_5, %c0_6] : memref<4x128xf32, #tpu.memory_space<vmem>>, vector<4x128xf32>
    tpu.vector_store %arg4[%c0_5, %c0_6], %12 {strides = array<i32>} : memref<4x128xf32, #tpu.memory_space<vmem>>, vector<4x128xf32>,
    %14 = vector.extract_strided_slice %1 {offsets = [1, 0], sizes = [1, 128], strides = [1, 1]} : vector<3x128xf32> to vector<1x128xf32>
    %15 = vector.shape_cast %14 : vector<1x128xf32> to vector<128xf32>
    %16 = vector.shape_cast %15 : vector<128xf32> to vector<1x128xf32>
    %17 = vector.broadcast %16 : vector<1x128xf32> to vector<4x128xf32>
    %18 = arith.mulf %0, %17 : vector<4x128xf32>
    %19 = vector.extract_strided_slice %2 {offsets = [1, 0], sizes = [1, 128], strides = [1, 1]} : vector<3x128xf32> to vector<1x128xf32>
    %20 = vector.shape_cast %19 : vector<1x128xf32> to vector<128xf32>
    %21 = vector.shape_cast %20 : vector<128xf32> to vector<1x128xf32>
    %22 = vector.broadcast %21 : vector<1x128xf32> to vector<4x128xf32>
    %23 = arith.addf %18, %22 : vector<4x128xf32>
    %c0_7 = arith.constant 0 : index
    %c0_8 = arith.constant 0 : index
    %24 = vector.load %arg5[%c0_7, %c0_8] : memref<4x128xf32, #tpu.memory_space<vmem>>, vector<4x128xf32>
    tpu.vector_store %arg5[%c0_7, %c0_8], %23 {strides = array<i32>} : memref<4x128xf32, #tpu.memory_space<vmem>>, vector<4x128xf32>,
    %25 = vector.extract_strided_slice %1 {offsets = [2, 0], sizes = [1, 128], strides = [1, 1]} : vector<3x128xf32> to vector<1x128xf32>
    %26 = vector.shape_cast %25 : vector<1x128xf32> to vector<128xf32>
    %27 = vector.shape_cast %26 : vector<128xf32> to vector<1x128xf32>
    %28 = vector.broadcast %27 : vector<1x128xf32> to vector<4x128xf32>
    %29 = arith.mulf %0, %28 : vector<4x128xf32>
    %30 = vector.extract_strided_slice %2 {offsets = [2, 0], sizes = [1, 128], strides = [1, 1]} : vector<3x128xf32> to vector<1x128xf32>
    %31 = vector.shape_cast %30 : vector<1x128xf32> to vector<128xf32>
    %32 = vector.shape_cast %31 : vector<128xf32> to vector<1x128xf32>
    %33 = vector.broadcast %32 : vector<1x128xf32> to vector<4x128xf32>
    %34 = arith.addf %29, %33 : vector<4x128xf32>
    %c0_9 = arith.constant 0 : index
    %c0_10 = arith.constant 0 : index
    %35 = vector.load %arg6[%c0_9, %c0_10] : memref<4x128xf32, #tpu.memory_space<vmem>>, vector<4x128xf32>
    tpu.vector_store %arg6[%c0_9, %c0_10], %34 {strides = array<i32>} : memref<4x128xf32, #tpu.memory_space<vmem>>, vector<4x128xf32>,
    return
  }
  func.func @transform_0(%arg0: i32) -> (i32, i32) {
    %c0_i32 = arith.constant 0 : i32
    %c0_i32_0 = arith.constant 0 : i32
    return %arg0, %c0_i32 : i32, i32
  }
  func.func @transform_1(%arg0: i32) -> (i32, i32) {
    %c0_i32 = arith.constant 0 : i32
    %c0_i32_0 = arith.constant 0 : i32
    %c0_i32_1 = arith.constant 0 : i32
    return %c0_i32, %c0_i32_0 : i32, i32
  }
  func.func @transform_2(%arg0: i32) -> (i32, i32) {
    %c0_i32 = arith.constant 0 : i32
    %c0_i32_0 = arith.constant 0 : i32
    %c0_i32_1 = arith.constant 0 : i32
    return %c0_i32, %c0_i32_0 : i32, i32
  }
  func.func @transform_3(%arg0: i32) -> (i32, i32) {
    %c0_i32 = arith.constant 0 : i32
    %c0_i32_0 = arith.constant 0 : i32
    return %arg0, %c0_i32 : i32, i32
  }
  func.func @transform_4(%arg0: i32) -> (i32, i32) {
    %c0_i32 = arith.constant 0 : i32
    %c0_i32_0 = arith.constant 0 : i32
    return %arg0, %c0_i32 : i32, i32
  }
  func.func @transform_5(%arg0: i32) -> (i32, i32) {
    %c0_i32 = arith.constant 0 : i32
    %c0_i32_0 = arith.constant 0 : i32
    return %arg0, %c0_i32 : i32, i32
  }
}

</mosaic_0001>

<bundles_post_ra>
// kernel: tpu_custom_call.1
= control target key start
LH: loop header
LB: loop body
LE: loop exit
PB: predicated region body
PF: predicated region fallthrough
CT: control target
= control target key end

     0   :  { %11 = vsyncpa [#allocation3], 0  ;;  %s321_s0 = inlined_call_operand.hbm [shape: f32[4,128], index: 0, kind: input, shape index: {}]   ;;  %s322_s1 = inlined_call_operand.hbm [shape: f32[3,128], index: 1, kind: input, shape index: {}]   ;;  %s323_s2 = inlined_call_operand.hbm [shape: f32[3,128], index: 2, kind: input, shape index: {}]   ;;  %s324_s3 = inlined_call_operand.hbm [shape: f32[4,128], index: 3, kind: output, shape index: {0}]   ;;  %s325_s4 = inlined_call_operand.hbm [shape: f32[4,128], index: 4, kind: output, shape index: {1}]   ;;  %s326_s5 = inlined_call_operand.hbm [shape: f32[4,128], index: 5, kind: output, shape index: {2}]  }
   0x1   :  { %12 = vsyncpa [#allocation6], 0 }
   0x2   :  { %13 = vsyncpa [#allocation4], 0 }
   0x3   :  { %14 = vsyncpa [#allocation10], 0  ;;  %s267_s18 = smov [#allocation5]   ;;  %s268_s20 = smov [#allocation2]  }
   0x4   :  { %s31_s19 = sshll.u32 %s267_s18, 4  ;;  %s21_s21 = sshll.u32 %s268_s20, 4  ;;  %s32_s19 = int_to_ptr.vmem [resolvable:$true] %s31_s19  ;;  %s22_s21 = int_to_ptr.vmem [resolvable:$true] %s21_s21 }
   0x5   :  { %s147_s22 = scalar_lea.vmem %s32_s19, 64  ;;  %p152_p1 = scmp.lt.s32.totalorder %s32_s19, %s32_s19 }
   0x6   :  { %p148_p0 = scmp.ne.s32.totalorder %s32_s19, %s147_s22  ;;  %p153_p2 = scmp.lt.s32.totalorder %s147_s22, %s147_s22 }
   0x8   :  { %p154_p3 = por %p153_p2, %p152_p1 }
   0xa   :  { %p155_p4 = pnand %p154_p3, %p148_p0 }
   0xc   :  { %158 = shalt.err (!%p155_p4)
}
   0xd   :  { %34 = dma.hbm_to_vmem [thread:$0]  %s322_s1, 64, %s32_s19, [#allocation6]  }
   0xe   :  { %s167_s25 = scalar_lea.vmem %s22_s21, 64  ;;  %p172_p6 = scmp.lt.s32.totalorder %s22_s21, %s22_s21 }
   0xf   :  { %p168_p5 = scmp.ne.s32.totalorder %s22_s21, %s167_s25  ;;  %p173_p7 = scmp.lt.s32.totalorder %s167_s25, %s167_s25 }
  0x11   :  { %p174_p8 = por %p173_p7, %p172_p6 }
  0x13   :  { %p175_p9 = pnand %p174_p8, %p168_p5 }
  0x15   :  { %178 = shalt.err (!%p175_p9)
}
  0x16   :  { %24 = dma.hbm_to_vmem [thread:$0]  %s321_s0, 64, %s22_s21, [#allocation3]  }
  0x17   :  { %s269_s28 = smov [#allocation7]  }
  0x18   :  { %s41_s29 = sshll.u32 %s269_s28, 4  ;;  %s42_s29 = int_to_ptr.vmem [resolvable:$true] %s41_s29 }
  0x19   :  { %s187_s30 = scalar_lea.vmem %s42_s29, 64  ;;  %p192_p11 = scmp.lt.s32.totalorder %s42_s29, %s42_s29 }
  0x1a   :  { %p188_p10 = scmp.ne.s32.totalorder %s42_s29, %s187_s30  ;;  %p193_p12 = scmp.lt.s32.totalorder %s187_s30, %s187_s30 }
  0x1c   :  { %p194_p13 = por %p193_p12, %p192_p11 }
  0x1e   :  { %p195_p0 = pnand %p194_p13, %p188_p10 }
  0x20   :  { %198 = shalt.err (!%p195_p0)
}
  0x21   :  { %44 = dma.hbm_to_vmem [thread:$0]  %s323_s2, 64, %s42_s29, [#allocation6]  }
  0x22   :  { %259 = dma.done.wait [#allocation3], 64  }
  0x23   :  { %260 = vsyncadd [#allocation3], 4294967232 }
  0x24   :  { %261 = dma.done.wait [#allocation6], 128  }
  0x25   :  { %262 = vsyncadd [#allocation6], 4294967168  ;;  %v57_v0 = vlaneseq  ;;  %v54_v5 = vld [vmem:[#allocation2] sm:$0xf]  ;;  %v55_v6 = vld [vmem:[#allocation5] sm:$0x7] }
  0x26   :  { %v56_v7 = vld [vmem:[#allocation7] sm:$0x7]  ;;  %s270_s0 = smov [#allocation9]   ;;  %s271_s7 = smov [#allocation8]  }
  0x27   :  { %v58_v1 = vshrl.u32 %v57_v0, 7  ;;  %s106_s2 = sshll.u32 %s270_s0, 4  ;;  %s96_s8 = sshll.u32 %s271_s7, 4  ;;  %s107_s2 = int_to_ptr.vmem [resolvable:$true] %s106_s2  ;;  %s97_s8 = int_to_ptr.vmem [resolvable:$true] %s96_s8 }
  0x28   :  { %s272_s9 = smov [#allocation11]   ;;  %s199_s11 = scalar_lea.vmem %s107_s2, 64 }
  0x29   :  { %v70_v2 = vsub.s32 1, %v58_v1  ;;  %v59_v3 = vsub.s32 0, %v58_v1  ;;  %v81_v4 = vsub.s32 2, %v58_v1  ;;  %s116_s10 = sshll.u32 %s272_s9, 4  ;;  %p200_p1 = scmp.ne.s32.totalorder %s107_s2, %s199_s11  ;;  %s117_s10 = int_to_ptr.vmem [resolvable:$true] %s116_s10 }
  0x2a   :  { %p204_p2 = scmp.lt.s32.totalorder %s107_s2, %s107_s2  ;;  %p205_p3 = scmp.lt.s32.totalorder %s199_s11, %s199_s11 }
  0x2b   :  { %v71_v8 = vrot.slane %v55_v6, %v70_v2  ;;  %v76_v9 = vrot.slane %v56_v7, %v70_v2  ;;  %v60_v10 = vrot.slane %v55_v6, %v59_v3  ;;  %v65_v11 = vrot.slane %v56_v7, %v59_v3 }
  0x2c   :  { %v82_v12 = vrot.slane %v55_v6, %v81_v4  ;;  %v87_v13 = vrot.slane %v56_v7, %v81_v4  ;;  %p206_p4 = por %p205_p3, %p204_p2 }
  0x2d   :  { %v72_v14 = vmul.f32 %v71_v8, %v54_v5  ;;  %v61_v15 = vmul.f32 %v60_v10, %v54_v5 }
  0x2e   :  { %v83_v16 = vmul.f32 %v82_v12, %v54_v5  ;;  %p207_p5 = pnand %p206_p4, %p200_p1 }
  0x2f   :  { %v77_v17 = vadd.f32 %v76_v9, %v72_v14  ;;  %v66_v18 = vadd.f32 %v65_v11, %v61_v15 }
  0x30   :  { %v88_v19 = vadd.f32 %v87_v13, %v83_v16 }
  0x31   :  { %78 = vst [vmem:[#allocation9] sm:$0xf] %v77_v17  ;;  %67 = vst [vmem:[#allocation8] sm:$0xf] %v66_v18 }
  0x32   :  { %89 = vst [vmem:[#allocation11] sm:$0xf] %v88_v19 }
  0x33   :  { %210 = shalt.err (!%p207_p5)
}
  0x34   :  { %109 = dma.vmem_to_hbm [thread:$0]  %s107_s2, 64, %s325_s4, [#allocation10]  }
  0x35   :  { %s219_s14 = scalar_lea.vmem %s97_s8, 64  ;;  %p224_p7 = scmp.lt.s32.totalorder %s97_s8, %s97_s8 }
  0x36   :  { %p220_p6 = scmp.ne.s32.totalorder %s97_s8, %s219_s14  ;;  %p225_p8 = scmp.lt.s32.totalorder %s219_s14, %s219_s14 }
  0x38   :  { %p226_p9 = por %p225_p8, %p224_p7 }
  0x3a   :  { %p227_p10 = pnand %p226_p9, %p220_p6 }
  0x3c   :  { %230 = shalt.err (!%p227_p10)
}
  0x3d   :  { %99 = dma.vmem_to_hbm [thread:$0]  %s97_s8, 64, %s324_s3, [#allocation4]  }
  0x3e   :  { %s239_s17 = scalar_lea.vmem %s117_s10, 64  ;;  %p244_p12 = scmp.lt.s32.totalorder %s117_s10, %s117_s10 }
  0x3f   :  { %p240_p11 = scmp.ne.s32.totalorder %s117_s10, %s239_s17  ;;  %p245_p13 = scmp.lt.s32.totalorder %s239_s17, %s239_s17 }
  0x41   :  { %p246_p0 = por %p245_p13, %p244_p12 }
  0x43   :  { %p247_p1 = pnand %p246_p0, %p240_p11 }
  0x45   :  { %250 = shalt.err (!%p247_p1)
}
  0x46   :  { %119 = dma.vmem_to_hbm [thread:$0]  %s117_s10, 64, %s326_s5, [#allocation10]  }
  0x47   :  { %263 = dma.done.wait [#allocation4], 64  }
  0x48   :  { %264 = vsyncadd [#allocation4], 4294967232 }
  0x49   :  { %265 = dma.done.wait [#allocation10], 128  }
  0x4a   :  { %266 = vsyncadd [#allocation10], 4294967168 }
  0x4b   :  { %129 = vsyncpa [#allocation3], 1 }
  0x4c   :  { %130 = vsyncpa [#allocation6], 1 }
  0x4d   :  { %131 = vsyncpa [#allocation4], 1 }
  0x4e   :  { %132 = vsyncpa [#allocation10], 1 }

</bundles_post_ra>
